<compile_context>
chip_gen: v7x
topology: tpu7x:2x2x1
jax: 0.10.0
libtpu: 0.0.40
codegen_flags: <defaults>
</compile_context>

<pallas_src>
import functools

import jax
import jax.numpy as jnp
import numpy as np
from jax import lax
from jax.experimental import pallas as pl
from jax.experimental.pallas import tpu as pltpu

LANES = 128
MAX_ROWS_PER_TILE = 2048   # rows of 128 lanes per hw tile (multiple of 8)


def centercrop(image, w, h):
    # identical python-slicing semantics to the torch helper (NCHW)
    nt, ct, ht, wt = image.shape
    padw, padh = (wt - w) // 2, (ht - h) // 2
    if padw > 0 and padh > 0:
        image = image[:, :, padh:-padh, padw:-padw]
    return image


def _mce_dice_kernel(x_ref, t_ref, out_ref, *, s_tile, acc_s, rows, ragged):
    s = pl.program_id(1)

    @pl.when(s == 0)
    def _init():
        out_ref[...] = jnp.zeros_like(out_ref)

    x = x_ref[0].astype(jnp.float32)    # (2, s_tile, 128) logits, channels 0..1
    t = t_ref[0].astype(jnp.float32)    # (2, s_tile, 128) cropped targets, ch 0..1

    # Stable BCE-with-logits reusing exp(-|x|) for the channel-1 sigmoid:
    #   bce        = max(x, 0) - x*t + log(1 + e),          e = exp(-|x|)
    #   sigmoid(x) = 1/(1+e)      if x >= 0
    #              = e/(1+e)      if x <  0
    e = jnp.exp(-jnp.abs(x))
    bce = jnp.maximum(x, 0.0) - x * t + jnp.log(1.0 + e)
    bce_c = bce[0] + bce[1]                              # (s_tile, 128)

    r = 1.0 / (1.0 + e[1])
    p1 = jnp.where(x[1] >= 0.0, r, e[1] * r)             # exact sigmoid(ch-1 logits)
    t1 = (t[1] == 1.0).astype(jnp.float32)               # dice target mask

    if ragged:
        # Last hw tile overhangs the array: Pallas pads OOB block reads with
        # unspecified values, so zero those rows' contributions here.
        row_id = s * s_tile + lax.broadcasted_iota(jnp.int32, (s_tile, LANES), 0)
        valid = row_id < rows
        bce_c = jnp.where(valid, bce_c, 0.0)
        p1 = jnp.where(valid, p1, 0.0)
        t1 = jnp.where(valid, t1, 0.0)

    inter = p1 * t1

    def fold(v):
        # Fold the S axis in-register (pure VPU vreg adds, no XLU) so the
        # resident per-batch accumulator stays a tiny (4, acc_s, 128) block.
        return v.reshape(s_tile // acc_s, acc_s, LANES).sum(axis=0)

    out_ref[0, 0, :, :] = out_ref[0, 0, :, :] + fold(bce_c)
    out_ref[0, 1, :, :] = out_ref[0, 1, :, :] + fold(p1)
    out_ref[0, 2, :, :] = out_ref[0, 2, :, :] + fold(t1)
    out_ref[0, 3, :, :] = out_ref[0, 3, :, :] + fold(inter)


def mce_dice_loss_pallas(y_pred, y_true, weight=None):
    # `weight` accepted but unused, exactly as in the torch forward.
    n, ch, h, w = y_pred.shape
    hw = h * w

    # centercrop the target; when cropping, restrict the (unavoidable) slice
    # copy to the two channels that are actually used.
    nt, ct, ht, wt = y_true.shape
    padw, padh = (wt - w) // 2, (ht - h) // 2
    if padw > 0 and padh > 0:
        yt = y_true[:, :2, padh:padh + h, padw:padw + w]
    else:
        yt = y_true
    yp = y_pred

    if hw % LANES == 0:
        # Zero-copy path: contiguous (free) reshape to lane-dense (rows, 128);
        # channels 0..1 are picked by the BlockSpec window — no wrapper slice.
        rows = hw // LANES
        yp4 = yp.reshape(n, ch, rows, LANES)
        yt4 = yt.reshape(n, yt.shape[1], rows, LANES)
    else:
        # Fallback: slice to the 2 used channels and pad the flattened spatial
        # axis with dtype-safe values whose BCE / sigmoid contributions are 0.
        rows = pl.cdiv(hw, LANES)
        pad = rows * LANES - hw
        neg = float(jnp.finfo(yp.dtype).min) if jnp.issubdtype(
            yp.dtype, jnp.floating) else -1e9
        yp4 = jnp.pad(yp[:, :2].reshape(n, 2, hw),
                      ((0, 0), (0, 0), (0, pad)),
                      constant_values=neg).reshape(n, 2, rows, LANES)
        yt4 = jnp.pad(yt[:, :2].reshape(n, 2, hw),
                      ((0, 0), (0, 0), (0, pad)),
                      constant_values=0).reshape(n, 2, rows, LANES)

    s_tile = rows if rows <= MAX_ROWS_PER_TILE else MAX_ROWS_PER_TILE
    num_tiles = pl.cdiv(rows, s_tile)
    ragged = (rows % s_tile) != 0
    acc_s = 8 if s_tile % 8 == 0 else s_tile

    kernel = functools.partial(_mce_dice_kernel, s_tile=s_tile, acc_s=acc_s,
                               rows=rows, ragged=ragged)
    # Per-batch partial sums: plane 0 = bce sum, 1 = sum(p1), 2 = sum(t1),
    # 3 = sum(p1*t1). Batch axis is 'parallel' (megacore on v7x), hw-tile
    # axis is the resident reduction ('arbitrary').
    parts = pl.pallas_call(
        kernel,
        out_shape=jax.ShapeDtypeStruct((n, 4, acc_s, LANES), jnp.float32),
        grid_spec=pltpu.PrefetchScalarGridSpec(
            num_scalar_prefetch=0,
            grid=(n, num_tiles),
            in_specs=[
                pl.BlockSpec((1, 2, s_tile, LANES), lambda b, s: (b, 0, s, 0)),
                pl.BlockSpec((1, 2, s_tile, LANES), lambda b, s: (b, 0, s, 0)),
            ],
            out_specs=pl.BlockSpec((1, 4, acc_s, LANES),
                                   lambda b, s: (b, 0, 0, 0)),
        ),
        compiler_params=pltpu.CompilerParams(
            dimension_semantics=("parallel", "arbitrary")),
    )(yp4, yt4)

    sums = jnp.sum(parts, axis=(0, 2, 3))          # (4,) tiny XLA combine
    bce_mean = sums[0] / jnp.float32(n * 2 * h * w)
    eps = jnp.float32(1e-15)
    dice = 2.0 * sums[3] / (sums[1] + sums[2] + eps)
    return bce_mean - jnp.log(dice)


def mce_dice_loss_ref(y_pred, y_true, weight=None):
    # pure-JAX reference mirroring the torch code
    n, ch, h, w = y_pred.shape
    yt = centercrop(y_true, w, h)
    x = y_pred[:, :2].astype(jnp.float32)
    t = yt[:, :2].astype(jnp.float32)
    bce = jnp.mean(jnp.maximum(x, 0.0) - x * t
                   + jnp.log(1.0 + jnp.exp(-jnp.abs(x))))
    eps = 1e-15
    p1 = jax.nn.sigmoid(y_pred[:, 1].astype(jnp.float32))
    t1 = (yt[:, 1] == 1).astype(jnp.float32)
    inter = jnp.sum(p1 * t1)
    union = jnp.sum(p1) + jnp.sum(t1) + eps
    return bce - jnp.log(2.0 * inter / union)


if __name__ == "__main__":
    key = jax.random.PRNGKey(0)
    k1, k2 = jax.random.split(key)

    N, CH, H, W = 2, 4, 16, 16
    # logits (NCHW) and a larger one-hot target (NCHW) so centercrop is exercised
    y_pred = jax.random.normal(k1, (N, CH, H, W), dtype=jnp.float32)
    labels = jax.random.randint(k2, (N, H + 4, W + 4), 0, CH)
    y_true = jnp.transpose(jax.nn.one_hot(labels, CH, dtype=jnp.float32),
                           (0, 3, 1, 2))           # (N, CH, H+4, W+4)
    weight = jnp.ones((N, H, W), dtype=jnp.float32)  # unused, mirrors torch API

    out = jax.block_until_ready(mce_dice_loss_pallas(y_pred, y_true, weight))

    ref = mce_dice_loss_ref(y_pred, y_true, weight)
    np.testing.assert_allclose(np.asarray(out), np.asarray(ref),
                               rtol=1e-5, atol=1e-5)
    print("KERNEL_OK")
</pallas_src>

<mosaic_0001>
module attributes {stable_mosaic.version = 11 : i64} {
  func.func @_mce_dice_kernel(%arg0: i32, %arg1: i32, %arg2: memref<1x2x2x128xf32, #tpu.memory_space<vmem>>, %arg3: memref<1x2x2x128xf32, #tpu.memory_space<vmem>>, %arg4: memref<1x4x2x128xf32, #tpu.memory_space<vmem>>) attributes {dimension_semantics = [#tpu.dimension_semantics<parallel>, #tpu.dimension_semantics<arbitrary>], iteration_bounds = array<i64: 2, 1>, scalar_prefetch = 0 : i64, scratch_operands = 0 : i64, tpu.core_type = #tpu.core_type<tc>, window_params = [{transform_indices = @transform_0, window_bounds = array<i64: 1, 2, 2, 128>}, {transform_indices = @transform_1, window_bounds = array<i64: 1, 2, 2, 128>}, {transform_indices = @transform_2, window_bounds = array<i64: 1, 4, 2, 128>}]} {
    %c0_i32 = arith.constant 0 : i32
    %0 = arith.cmpi eq, %arg1, %c0_i32 : i32
    %1 = arith.extui %0 : i1 to i32
    %c0_i32_0 = arith.constant 0 : i32
    %2 = arith.cmpi ne, %1, %c0_i32_0 : i32
    scf.if %2 {
      %cst_47 = arith.constant 0.000000e+00 : f32
      %77 = vector.broadcast %cst_47 : f32 to vector<1x4x2x128xf32>
      %c0_48 = arith.constant 0 : index
      %c0_49 = arith.constant 0 : index
      %c0_50 = arith.constant 0 : index
      %c0_51 = arith.constant 0 : index
      %78 = vector.load %arg4[%c0_48, %c0_49, %c0_50, %c0_51] : memref<1x4x2x128xf32, #tpu.memory_space<vmem>>, vector<1x4x2x128xf32>
      tpu.vector_store %arg4[%c0_48, %c0_49, %c0_50, %c0_51], %77 {strides = array<i32>} : memref<1x4x2x128xf32, #tpu.memory_space<vmem>>, vector<1x4x2x128xf32>,
    } else {
    }
    %c0 = arith.constant 0 : index
    %c0_1 = arith.constant 0 : index
    %c0_2 = arith.constant 0 : index
    %c0_3 = arith.constant 0 : index
    %3 = vector.load %arg2[%c0, %c0_1, %c0_2, %c0_3] : memref<1x2x2x128xf32, #tpu.memory_space<vmem>>, vector<1x2x2x128xf32>
    %4 = vector.shape_cast %3 : vector<1x2x2x128xf32> to vector<2x2x128xf32>
    %c0_4 = arith.constant 0 : index
    %c0_5 = arith.constant 0 : index
    %c0_6 = arith.constant 0 : index
    %c0_7 = arith.constant 0 : index
    %5 = vector.load %arg3[%c0_4, %c0_5, %c0_6, %c0_7] : memref<1x2x2x128xf32, #tpu.memory_space<vmem>>, vector<1x2x2x128xf32>
    %6 = vector.shape_cast %5 : vector<1x2x2x128xf32> to vector<2x2x128xf32>
    %7 = math.absf %4 : vector<2x2x128xf32>
    %cst = arith.constant 0.000000e+00 : f32
    %8 = vector.broadcast %cst : f32 to vector<2x2x128xf32>
    %9 = arith.subf %8, %7 : vector<2x2x128xf32>
    %10 = math.exp %9 : vector<2x2x128xf32>
    %cst_8 = arith.constant 0.000000e+00 : f32
    %11 = vector.broadcast %cst_8 : f32 to vector<2x2x128xf32>
    %12 = arith.maximumf %4, %11 : vector<2x2x128xf32>
    %13 = arith.mulf %4, %6 : vector<2x2x128xf32>
    %14 = arith.subf %12, %13 : vector<2x2x128xf32>
    %cst_9 = arith.constant 1.000000e+00 : f32
    %15 = vector.broadcast %cst_9 : f32 to vector<2x2x128xf32>
    %16 = arith.addf %15, %10 : vector<2x2x128xf32>
    %17 = math.log %16 : vector<2x2x128xf32>
    %18 = arith.addf %14, %17 : vector<2x2x128xf32>
    %19 = vector.extract_strided_slice %18 {offsets = [0, 0, 0], sizes = [1, 2, 128], strides = [1, 1, 1]} : vector<2x2x128xf32> to vector<1x2x128xf32>
    %20 = vector.shape_cast %19 : vector<1x2x128xf32> to vector<2x128xf32>
    %21 = vector.extract_strided_slice %18 {offsets = [1, 0, 0], sizes = [1, 2, 128], strides = [1, 1, 1]} : vector<2x2x128xf32> to vector<1x2x128xf32>
    %22 = vector.shape_cast %21 : vector<1x2x128xf32> to vector<2x128xf32>
    %23 = arith.addf %20, %22 : vector<2x128xf32>
    %24 = vector.extract_strided_slice %10 {offsets = [1, 0, 0], sizes = [1, 2, 128], strides = [1, 1, 1]} : vector<2x2x128xf32> to vector<1x2x128xf32>
    %25 = vector.shape_cast %24 : vector<1x2x128xf32> to vector<2x128xf32>
    %cst_10 = arith.constant 1.000000e+00 : f32
    %26 = vector.broadcast %cst_10 : f32 to vector<2x128xf32>
    %27 = arith.addf %26, %25 : vector<2x128xf32>
    %cst_11 = arith.constant 1.000000e+00 : f32
    %28 = vector.broadcast %cst_11 : f32 to vector<2x128xf32>
    %29 = arith.divf %28, %27 : vector<2x128xf32>
    %30 = vector.extract_strided_slice %4 {offsets = [1, 0, 0], sizes = [1, 2, 128], strides = [1, 1, 1]} : vector<2x2x128xf32> to vector<1x2x128xf32>
    %31 = vector.shape_cast %30 : vector<1x2x128xf32> to vector<2x128xf32>
    %cst_12 = arith.constant 0.000000e+00 : f32
    %32 = vector.broadcast %cst_12 : f32 to vector<2x128xf32>
    %33 = arith.cmpf oge, %31, %32 : vector<2x128xf32>
    %34 = vector.extract_strided_slice %10 {offsets = [1, 0, 0], sizes = [1, 2, 128], strides = [1, 1, 1]} : vector<2x2x128xf32> to vector<1x2x128xf32>
    %35 = vector.shape_cast %34 : vector<1x2x128xf32> to vector<2x128xf32>
    %36 = arith.mulf %35, %29 : vector<2x128xf32>
    %37 = arith.select %33, %29, %36 : vector<2x128xi1>, vector<2x128xf32>
    %38 = vector.extract_strided_slice %6 {offsets = [1, 0, 0], sizes = [1, 2, 128], strides = [1, 1, 1]} : vector<2x2x128xf32> to vector<1x2x128xf32>
    %39 = vector.shape_cast %38 : vector<1x2x128xf32> to vector<2x128xf32>
    %cst_13 = arith.constant 1.000000e+00 : f32
    %40 = vector.broadcast %cst_13 : f32 to vector<2x128xf32>
    %41 = arith.cmpf oeq, %39, %40 : vector<2x128xf32>
    %42 = arith.extui %41 : vector<2x128xi1> to vector<2x128xi32>
    %43 = arith.sitofp %42 : vector<2x128xi32> to vector<2x128xf32>
    %44 = arith.mulf %37, %43 : vector<2x128xf32>
    %c0_14 = arith.constant 0 : index
    %c0_15 = arith.constant 0 : index
    %c0_16 = arith.constant 0 : index
    %c0_17 = arith.constant 0 : index
    %45 = vector.load %arg4[%c0_14, %c0_15, %c0_16, %c0_17] : memref<1x4x2x128xf32, #tpu.memory_space<vmem>>, vector<1x1x2x128xf32>
    %46 = vector.shape_cast %45 : vector<1x1x2x128xf32> to vector<2x128xf32>
    %47 = vector.shape_cast %23 : vector<2x128xf32> to vector<1x2x128xf32>
    %cst_18 = arith.constant dense<0.000000e+00> : vector<2x128xf32>
    %48 = vector.multi_reduction <add>, %47, %cst_18 [0] : vector<1x2x128xf32> to vector<2x128xf32>
    %49 = arith.addf %46, %48 : vector<2x128xf32>
    %c0_19 = arith.constant 0 : index
    %c0_20 = arith.constant 0 : index
    %c0_21 = arith.constant 0 : index
    %c0_22 = arith.constant 0 : index
    %50 = vector.load %arg4[%c0_19, %c0_20, %c0_21, %c0_22] : memref<1x4x2x128xf32, #tpu.memory_space<vmem>>, vector<1x1x2x128xf32>
    %51 = vector.shape_cast %50 : vector<1x1x2x128xf32> to vector<2x128xf32>
    %52 = vector.shape_cast %49 : vector<2x128xf32> to vector<1x1x2x128xf32>
    tpu.vector_store %arg4[%c0_19, %c0_20, %c0_21, %c0_22], %52 {strides = array<i32>} : memref<1x4x2x128xf32, #tpu.memory_space<vmem>>, vector<1x1x2x128xf32>,
    %c0_23 = arith.constant 0 : index
    %c1 = arith.constant 1 : index
    %c0_24 = arith.constant 0 : index
    %c0_25 = arith.constant 0 : index
    %53 = vector.load %arg4[%c0_23, %c1, %c0_24, %c0_25] : memref<1x4x2x128xf32, #tpu.memory_space<vmem>>, vector<1x1x2x128xf32>
    %54 = vector.shape_cast %53 : vector<1x1x2x128xf32> to vector<2x128xf32>
    %55 = vector.shape_cast %37 : vector<2x128xf32> to vector<1x2x128xf32>
    %cst_26 = arith.constant dense<0.000000e+00> : vector<2x128xf32>
    %56 = vector.multi_reduction <add>, %55, %cst_26 [0] : vector<1x2x128xf32> to vector<2x128xf32>
    %57 = arith.addf %54, %56 : vector<2x128xf32>
    %c0_27 = arith.constant 0 : index
    %c1_28 = arith.constant 1 : index
    %c0_29 = arith.constant 0 : index
    %c0_30 = arith.constant 0 : index
    %58 = vector.load %arg4[%c0_27, %c1_28, %c0_29, %c0_30] : memref<1x4x2x128xf32, #tpu.memory_space<vmem>>, vector<1x1x2x128xf32>
    %59 = vector.shape_cast %58 : vector<1x1x2x128xf32> to vector<2x128xf32>
    %60 = vector.shape_cast %57 : vector<2x128xf32> to vector<1x1x2x128xf32>
    tpu.vector_store %arg4[%c0_27, %c1_28, %c0_29, %c0_30], %60 {strides = array<i32>} : memref<1x4x2x128xf32, #tpu.memory_space<vmem>>, vector<1x1x2x128xf32>,
    %c0_31 = arith.constant 0 : index
    %c2 = arith.constant 2 : index
    %c0_32 = arith.constant 0 : index
    %c0_33 = arith.constant 0 : index
    %61 = vector.load %arg4[%c0_31, %c2, %c0_32, %c0_33] : memref<1x4x2x128xf32, #tpu.memory_space<vmem>>, vector<1x1x2x128xf32>
    %62 = vector.shape_cast %61 : vector<1x1x2x128xf32> to vector<2x128xf32>
    %63 = vector.shape_cast %43 : vector<2x128xf32> to vector<1x2x128xf32>
    %cst_34 = arith.constant dense<0.000000e+00> : vector<2x128xf32>
    %64 = vector.multi_reduction <add>, %63, %cst_34 [0] : vector<1x2x128xf32> to vector<2x128xf32>
    %65 = arith.addf %62, %64 : vector<2x128xf32>
    %c0_35 = arith.constant 0 : index
    %c2_36 = arith.constant 2 : index
    %c0_37 = arith.constant 0 : index
    %c0_38 = arith.constant 0 : index
    %66 = vector.load %arg4[%c0_35, %c2_36, %c0_37, %c0_38] : memref<1x4x2x128xf32, #tpu.memory_space<vmem>>, vector<1x1x2x128xf32>
    %67 = vector.shape_cast %66 : vector<1x1x2x128xf32> to vector<2x128xf32>
    %68 = vector.shape_cast %65 : vector<2x128xf32> to vector<1x1x2x128xf32>
    tpu.vector_store %arg4[%c0_35, %c2_36, %c0_37, %c0_38], %68 {strides = array<i32>} : memref<1x4x2x128xf32, #tpu.memory_space<vmem>>, vector<1x1x2x128xf32>,
    %c0_39 = arith.constant 0 : index
    %c3 = arith.constant 3 : index
    %c0_40 = arith.constant 0 : index
    %c0_41 = arith.constant 0 : index
    %69 = vector.load %arg4[%c0_39, %c3, %c0_40, %c0_41] : memref<1x4x2x128xf32, #tpu.memory_space<vmem>>, vector<1x1x2x128xf32>
    %70 = vector.shape_cast %69 : vector<1x1x2x128xf32> to vector<2x128xf32>
    %71 = vector.shape_cast %44 : vector<2x128xf32> to vector<1x2x128xf32>
    %cst_42 = arith.constant dense<0.000000e+00> : vector<2x128xf32>
    %72 = vector.multi_reduction <add>, %71, %cst_42 [0] : vector<1x2x128xf32> to vector<2x128xf32>
    %73 = arith.addf %70, %72 : vector<2x128xf32>
    %c0_43 = arith.constant 0 : index
    %c3_44 = arith.constant 3 : index
    %c0_45 = arith.constant 0 : index
    %c0_46 = arith.constant 0 : index
    %74 = vector.load %arg4[%c0_43, %c3_44, %c0_45, %c0_46] : memref<1x4x2x128xf32, #tpu.memory_space<vmem>>, vector<1x1x2x128xf32>
    %75 = vector.shape_cast %74 : vector<1x1x2x128xf32> to vector<2x128xf32>
    %76 = vector.shape_cast %73 : vector<2x128xf32> to vector<1x1x2x128xf32>
    tpu.vector_store %arg4[%c0_43, %c3_44, %c0_45, %c0_46], %76 {strides = array<i32>} : memref<1x4x2x128xf32, #tpu.memory_space<vmem>>, vector<1x1x2x128xf32>,
    return
  }
  func.func @transform_0(%arg0: i32, %arg1: i32) -> (i32, i32, i32, i32) {
    %c0_i32 = arith.constant 0 : i32
    %c0_i32_0 = arith.constant 0 : i32
    %c0_i32_1 = arith.constant 0 : i32
    return %arg0, %c0_i32, %arg1, %c0_i32_0 : i32, i32, i32, i32
  }
  func.func @transform_1(%arg0: i32, %arg1: i32) -> (i32, i32, i32, i32) {
    %c0_i32 = arith.constant 0 : i32
    %c0_i32_0 = arith.constant 0 : i32
    %c0_i32_1 = arith.constant 0 : i32
    return %arg0, %c0_i32, %arg1, %c0_i32_0 : i32, i32, i32, i32
  }
  func.func @transform_2(%arg0: i32, %arg1: i32) -> (i32, i32, i32, i32) {
    %c0_i32 = arith.constant 0 : i32
    %c0_i32_0 = arith.constant 0 : i32
    %c0_i32_1 = arith.constant 0 : i32
    %c0_i32_2 = arith.constant 0 : i32
    return %arg0, %c0_i32, %c0_i32_0, %c0_i32_1 : i32, i32, i32, i32
  }
}

</mosaic_0001>

<bundles_post_ra>
// kernel: tpu_custom_call.1
= control target key start
LH: loop header
LB: loop body
LE: loop exit
PB: predicated region body
PF: predicated region fallthrough
CT: control target
= control target key end

     0   :  { %7 = vsyncpa [#allocation3], 0  ;;  %s940_s0 = inlined_call_operand.hbm [shape: f32[2,4,2,128], index: 0, kind: input, shape index: {}]   ;;  %s941_s1 = inlined_call_operand.hbm [shape: f32[2,2,2,128], index: 1, kind: input, shape index: {}]   ;;  %s942_s2 = inlined_call_operand.hbm [shape: f32[2,4,2,128], index: 2, kind: output, shape index: {}]  }
   0x1   :  { %9 = vsyncpa [#allocation3 + $0x1], 0 }
   0x2   :  { %10 = vsyncpa [#allocation6], 0 }
   0x3   :  { %12 = vsyncpa [#allocation6 + $0x1], 0 }
   0x4   :  { %13 = vsyncpa [#allocation4], 0 }
   0x5   :  { %15 = vsyncpa [#allocation4 + $0x1], 0  ;;  %s687_s9 = smov 0   ;;  %s689_s10 = smov 0  }
   0x6   :  { %s691_s11 = smov 0   ;;  %s693_s12 = smov 0  }
   0x7   :  { %s695_s13 = smov 0   ;;  %s697_s14 = smov 0  }
   0x8 LB: > { %s405_s15 = sadd.s32 4294967295, %s662_s14   ;;  %s406_s16 = sadd.s32 4294967294, %s662_s14   ;;  %s662_s14 = sphi %s697_s14, %s21_s14   ;;  %s658_s13 = sphi %s695_s13, %s960_s13   ;;  %s654_s12 = sphi %s693_s12, %s959_s12   ;;  %s650_s11 = sphi %s691_s11, %s958_s11   ;;  %s646_s10 = sphi %s689_s10, %s957_s10   ;;  %s642_s9 = sphi %s687_s9, %s956_s9  }
   0x9   : > { %s33_s17 = sadd.s32 1, %s658_s13  ;;  %s42_s18 = sadd.s32 1, %s650_s11 }
   0xa   : > { %p35_p0 = scmp.ge.s32.totalorder %s33_s17, 2  ;;  %p49_p1 = scmp.ne.s32.totalorder %s650_s11, %s646_s10 }
   0xb   : > { %p50_p2 = scmp.eq.s32.totalorder %s662_s14, 0  ;;  %p55_p3 = scmp.ne.s32.totalorder %s646_s10, %s642_s9 }
   0xc   : > { %s962_s17 = smov (%p35_p0, %s33_s17), 0  ;;  %p56_p5 = scmp.eq.s32.totalorder %s405_s15, 0 }
   0xd   : > { %p728_p4 = por %p50_p2, %p49_p1  ;;  %s37_s20 = ssub.s32 %s658_s13, %s962_s17 }
   0xe   : > { %p107_p6 = scmp.eq.s32.totalorder %s405_s15, 1  ;;  %p40_p7 = scmp.eq.s32.totalorder %s37_s20, 0 }
   0xf   : > { %p734_p8 = por %p56_p5, %p55_p3  ;;  %p113_p10 = scmp.eq.s32.totalorder %s406_s16, 1 }
  0x10   : > { %p738_p9 = por %p107_p6, %p49_p1  ;;  %p451_p13 = scmp.lt.s32.totalorder %s662_s14, 2 }
  0x11   : > { %s946_s21 = scalar_select %p734_p8, 1, 0 }
  0x12   : > { %s947_s22 = scalar_select %p738_p9, 1, 0 }
  0x13   : > { %s743_s23 = scalar_select %p40_p7, %s650_s11, %s42_s18  }
  0x14   : > { %p745_p11 = por %p113_p10, %p55_p3  ;;  %s752_s25 = sand.u32 1, %s650_s11  }
  0x15   : > { %s409_s26 = sshll.u32 %s752_s25, 2  ;;  %s431_s27 = sshll.u32 %s658_s13, 7 }
  0x16   : > { %s948_s24 = scalar_select %p745_p11, 1, 0 }
  0x17   : > { %s759_s30 = scalar_lea.hbm %s940_s0, %s431_s27  ;;  %s137_s3 = scalar_lea.vmem [#allocation2], %s409_s26 }
  0x18   : > { %s145_s4 = sshll.u32 %s137_s3, 4  ;;  %p767_p0 = pnand %p451_p13, %p728_p4  ;;  %s763_s4 = int_to_ptr.vmem [resolvable:$true] %s145_s4 }
  0x19   : > { %s134_s6 = scalar_lea.sflag [#allocation3], %s752_s25  ;;  %s516_s7 = scalar_lea.hbm %s759_s30, 64 }
  0x1a   : > { %p517_p2 = scmp.ne.s32.totalorder %s759_s30, %s516_s7  ;;  %p518_p3 = pneg %p767_p0 }
  0x1b   : > { %s521_s16 = scalar_lea.hbm %s940_s0, 256  ;;  %p522_p4 = scmp.lt.u32.totalorder %s759_s30, %s940_s0 }
  0x1c   : > { %p519_p5 = pnand %p518_p3, %p517_p2  ;;  %p523_p7 = scmp.lt.u32.totalorder %s521_s16, %s516_s7 }
  0x1d   : > { %p525_p13 = scmp.lt.u32.totalorder %s516_s7, %s759_s30 }
  0x1e   : > { %p520_p6 = pneg %p519_p5  ;;  %p524_p10 = por %p523_p7, %p522_p4 }
  0x20   : > { %p526_p12 = por %p525_p13, %p524_p10 }
  0x22   : > { %p527_p1 = pnand %p526_p12, %p520_p6 }
  0x24   : > { %530 = shalt.err (!%p527_p1)
}
  0x25   : > { %s531_s20 = scalar_lea.vmem %s763_s4, 64  ;;  %s664_s27 = smov [#allocation2]  }
  0x26   : > { %p532_p2 = scmp.ne.s32.totalorder %s763_s4, %s531_s20  ;;  %s536_s28 = sshll.u32 %s664_s27, 4  ;;  %s537_s28 = int_to_ptr.vmem [resolvable:$false] %s536_s28 }
  0x27   : > { %s538_s29 = scalar_lea.vmem %s537_s28, 128  ;;  %p539_p9 = scmp.lt.s32.totalorder %s763_s4, %s537_s28 }
  0x28   : > { %p534_p5 = pnand %p532_p2, %p518_p3  ;;  %p540_p4 = scmp.lt.s32.totalorder %s538_s29, %s531_s20 }
  0x2a   : > { %p535_p11 = pneg %p534_p5  ;;  %p541_p7 = por %p540_p4, %p539_p9 }
  0x2c   : > { %p542_p10 = pnand %p541_p7, %p535_p11 }
  0x2e   : > { %545 = shalt.err (!%p542_p10)
}
  0x2f   : > { %s665_s3 = smov 32   ;;  %s666_s7 = smov 2  }
  0x30   : > { %443 = dma.hbm_to_vmem [thread:$0]  (!%p767_p0), %s759_s30, 64, %s763_s4, %s134_s6, %s665_s3, %s665_s3, %s666_s7  }
  0x31   : > { %p175_p9 = scmp.lt.s32.totalorder %s662_s14, 3  ;;  %s432_s8 = sshll.u32 %s658_s13, 6 }
  0x32   : > { %p950_p11 = scmp.ge.s32.totalorder %s662_s14, 1  ;;  %s814_s19 = scalar_lea.hbm %s941_s1, %s432_s8 }
  0x33   : > { %s159_s20 = scalar_lea.vmem [#allocation5], %s409_s26  ;;  %s156_s30 = scalar_lea.sflag [#allocation6], %s752_s25 }
  0x34   : > { %p807_p12 = pnand %p950_p11, %p175_p9  ;;  %s167_s27 = sshll.u32 %s159_s20, 4  ;;  %s818_s27 = int_to_ptr.vmem [resolvable:$true] %s167_s27 }
  0x35   : > { %s546_s4 = scalar_lea.hbm %s814_s19, 64  ;;  %s551_s29 = scalar_lea.hbm %s941_s1, 128 }
  0x36   : > { %p547_p1 = scmp.ne.s32.totalorder %s814_s19, %s546_s4  ;;  %p552_p2 = scmp.lt.u32.totalorder %s814_s19, %s941_s1 }
  0x37   : > { %p553_p5 = scmp.lt.u32.totalorder %s551_s29, %s546_s4  ;;  %p555_p7 = scmp.lt.u32.totalorder %s546_s4, %s814_s19 }
  0x38   : > { %p549_p6 = pnand %p547_p1, %p518_p3 }
  0x39   : > { %p554_p4 = por %p553_p5, %p552_p2 }
  0x3a   : > { %p550_p13 = pneg %p549_p6 }
  0x3b   : > { %p556_p10 = por %p555_p7, %p554_p4 }
  0x3d   : > { %p557_p9 = pnand %p556_p10, %p550_p13 }
  0x3f   : > { %560 = shalt.err (!%p557_p9)
}
  0x40   : > { %s561_s26 = scalar_lea.vmem %s818_s27, 64  ;;  %s667_s18 = smov [#allocation5]  }
  0x41   : > { %p562_p11 = scmp.ne.s32.totalorder %s818_s27, %s561_s26  ;;  %s566_s20 = sshll.u32 %s667_s18, 4  ;;  %s567_s20 = int_to_ptr.vmem [resolvable:$false] %s566_s20 }
  0x42   : > { %s568_s6 = scalar_lea.vmem %s567_s20, 128  ;;  %p569_p8 = scmp.lt.s32.totalorder %s818_s27, %s567_s20 }
  0x43   : > { %p564_p1 = pnand %p562_p11, %p518_p3  ;;  %p570_p2 = scmp.lt.s32.totalorder %s568_s6, %s561_s26 }
  0x45   : > { %p565_p6 = pneg %p564_p1  ;;  %p571_p5 = por %p570_p2, %p569_p8 }
  0x47   : > { %p572_p4 = pnand %p571_p5, %p565_p6 }
  0x49   : > { %575 = shalt.err (!%p572_p4)
}
  0x4a   : > { %446 = dma.hbm_to_vmem [thread:$0]  (!%p767_p0), %s814_s19, 64, %s818_s27, %s156_s30, %s665_s3, %s665_s3, %s666_s7  }
  0x4b   : > { %179 = sbr.rel (%p807_p12) target bundleno = 141 (0x8d), region = 28  ;;  %s852_s4 = sand.u32 (!%p807_p12), 1, %s646_s10  }
  0x4c   : > { %s416_s28 = sshll.u32 (!%p807_p12), %s852_s4, 2  ;;  %s182_s29 = scalar_lea.sflag (!%p807_p12), [#allocation3], %s852_s4 }
  0x4d   : > { %s185_s5 = scalar_lea.vmem (!%p807_p12), [#allocation2], %s416_s28  ;;  %p952_p8 = scmp.ne.s32.totalorder (!%p807_p12), %s946_s21, 0 }
  0x52   : > { %629 = dma.done.wait (%p952_p8), %s182_s29, 64  }
  0x53   : > { %631 = vsyncadd (%p952_p8), %s182_s29, 4294967232  ;;  %s191_s25 = scalar_lea.sflag [#allocation6], %s852_s4  ;;  %s861_s3 = scalar_lea.vmem [#allocation5], %s416_s28 }
  0x54   : > { %633 = dma.done.wait (%p952_p8), %s191_s25, 64  }
  0x55   : > { %635 = vsyncadd (%p952_p8), %s191_s25, 4294967232  ;;  %s418_s7 = sshll.u32 %s852_s4, 3  ;;  %v668_v0 = vmov 0.0   ;;  %v228_v1 = vld [vmem:[%s185_s5] sm:$0x3]  ;;  %s433_s21 = sshll.u32 %s654_s12, 7 }
  0x56   : > { %s868_s15 = scalar_lea.vmem [#allocation7], %s418_s7  ;;  %v229_v2 = vld [vmem:[%s185_s5 + $0x2] sm:$0x3]  ;;  %v232_v3 = vand.u32 2147483647, %v228_v1  ;;  %v240_v18 = vmax.f32 %v228_v1, 0.0  ;;  %s886_s8 = scalar_lea.hbm %s942_s2, %s433_s21 }
  0x57   : > { %224 = vst [vmem:[%s868_s15] sm:$0x3] %v668_v0  ;;  %225 = vst [vmem:[%s868_s15 + $0x2] sm:$0x3] %v668_v0  ;;  %v233_v4 = vand.u32 2147483647, %v229_v2  ;;  %v241_v20 = vmax.f32 %v229_v2, 0.0 }
  0x58   : > { %226 = vst [vmem:[%s868_s15 + $0x4] sm:$0x3] %v668_v0  ;;  %227 = vst [vmem:[%s868_s15 + $0x6] sm:$0x3] %v668_v0  ;;  %v231_v5 = vld [vmem:[%s861_s3 + $0x2] sm:$0x3] }
  0x59   : > { %v234_v6 = vsub.f32 0.0, %v232_v3  ;;  %v235_v7 = vsub.f32 0.0, %v233_v4  ;;  %vm260_vm0 = vcmp.eq.f32.partialorder %v231_v5, 1.0  ;;  %v230_v17 = vld [vmem:[%s861_s3] sm:$0x3]  ;;  %v243_v21 = vmul.f32 %v231_v5, %v229_v2  ;;  %s297_s19 = sshll.u32 %s868_s15, 4  ;;  %s888_s19 = int_to_ptr.vmem [resolvable:$true] %s297_s19 }
  0x5a   : > { %v419_v8 = vsel %vm260_vm0, 1.0, %v668_v0  ;;  %v242_v19 = vmul.f32 %v230_v17, %v228_v1  ;;  %vm257_vm1 = vcmp.ge.f32.partialorder %v229_v2, 0.0  ;;  %s284_s12 = scalar_lea.sflag [#allocation4], %s852_s4  ;;  %s576_s16 = scalar_lea.vmem %s888_s19, 128 }
  0x5b   : > { %v236_v10 = vmul.f32 1.442695, %v234_v6  ;;  %v238_v11 = vmul.f32 1.442695, %v235_v7  ;;  %v245_v24 = vsub.f32 %v241_v20, %v243_v21  ;;  %p577_p0 = scmp.ne.s32.totalorder %s888_s19, %s576_s16  ;;  %p953_p3 = scmp.ne.s32.totalorder %s947_s22, 0 }
  0x5c   : > { %v244_v22 = vsub.f32 %v240_v18, %v242_v19  ;;  %s669_s26 = smov [#allocation7]  }
  0x5d   : > { %506 = vpow2.f32 %v236_v10  ;;  %p578_p12 = pnand %p577_p0, %p953_p3  ;;  %s580_s18 = sshll.u32 %s669_s26, 4  ;;  %s581_s18 = int_to_ptr.vmem [resolvable:$false] %s580_s18 }
  0x5e   : > { %508 = vpow2.f32 %v238_v11  ;;  %v420_v31 = vld [vmem:[%s868_s15 + $0x2] sm:$0x3]  ;;  %v264_v33 = vld [vmem:[%s868_s15] sm:$0x3]  ;;  %s582_s20 = scalar_lea.vmem %s581_s18, 256  ;;  %p583_p7 = scmp.lt.s32.totalorder %s888_s19, %s581_s18 }
  0x5f   : > { %v422_v9 = vld [vmem:[%s868_s15 + $0x4] sm:$0x3]  ;;  %v424_v35 = vld [vmem:[%s868_s15 + $0x6] sm:$0x3]  ;;  %p579_p13 = pneg %p578_p12  ;;  %p584_p10 = scmp.lt.s32.totalorder %s582_s20, %s576_s16 }
  0x60   : > { %v276_v12 = vadd.f32 %v422_v9, %v419_v8 }
  0x61   : > { %p585_p9 = por %p584_p10, %p583_p7 }
  0x62   : > { %423 = vst [vmem:[%s868_s15 + $0x4] sm:$0x3] %v276_v12 }
  0x63   : > { %p586_p11 = pnand %p585_p9, %p579_p13 }
  0x67   : > { %v507_v13 = vpop.eup %506 }
  0x68   : > { %v509_v14 = vpop.eup %508  ;;  %v246_v15 = vadd.f32 1.0, %v507_v13 }
  0x69   : > { %v247_v16 = vadd.f32 1.0, %v509_v14 }
  0x6a   : > { %510 = vlog2.f32 %v246_v15 }
  0x6b   : > { %512 = vlog2.f32 %v247_v16 }
  0x6c   : > { %514 = vrcp.f32 %v247_v16 }
  0x74   : > { %v511_v23 = vpop.eup %510 }
  0x75   : > { %v513_v25 = vpop.eup %512  ;;  %v249_v26 = vmul.f32 0.6931472, %v511_v23 }
  0x76   : > { %v515_v27 = vpop.eup %514  ;;  %v251_v28 = vmul.f32 0.6931472, %v513_v25 }
  0x77   : > { %v252_v29 = vadd.f32 %v249_v26, %v244_v22  ;;  %v258_v30 = vmul.f32 %v515_v27, %v509_v14 }
  0x78   : > { %v253_v32 = vadd.f32 %v251_v28, %v245_v24 }
  0x79   : > { %v259_v34 = vsel %vm257_vm1, %v515_v27, %v258_v30 }
  0x7a   : > { %v254_v36 = vadd.f32 %v253_v32, %v252_v29  ;;  %v271_v37 = vadd.f32 %v420_v31, %v259_v34  ;;  %v263_v38 = vmul.f32 %v419_v8, %v259_v34 }
  0x7c   : > { %v266_v39 = vadd.f32 %v264_v33, %v254_v36  ;;  %421 = vst [vmem:[%s868_s15 + $0x2] sm:$0x3] %v271_v37  ;;  %v281_v40 = vadd.f32 %v424_v35, %v263_v38 }
  0x7e   : > { %267 = vst [vmem:[%s868_s15] sm:$0x3] %v266_v39  ;;  %425 = vst [vmem:[%s868_s15 + $0x6] sm:$0x3] %v281_v40 }
  0x7f   : > { %589 = shalt.err (!%p586_p11)
}
  0x80   : > { %s590_s6 = scalar_lea.hbm %s886_s8, 128  ;;  %s594_s5 = scalar_lea.hbm %s942_s2, 256 }
  0x81   : > { %p591_p1 = scmp.ne.s32.totalorder %s886_s8, %s590_s6  ;;  %p595_p5 = scmp.lt.u32.totalorder %s886_s8, %s942_s2 }
  0x82   : > { %p596_p4 = scmp.lt.u32.totalorder %s594_s5, %s590_s6  ;;  %p598_p0 = scmp.lt.u32.totalorder %s590_s6, %s886_s8 }
  0x83   : > { %p592_p6 = pnand %p591_p1, %p953_p3 }
  0x84   : > { %p597_p8 = por %p596_p4, %p595_p5 }
  0x85   : > { %p593_p2 = pneg %p592_p6 }
  0x86   : > { %p599_p12 = por %p598_p0, %p597_p8 }
  0x88   : > { %p600_p13 = pnand %p599_p12, %p593_p2 }
  0x8a   : > { %603 = shalt.err (!%p600_p13)
}
  0x8b   : > { %s670_s7 = smov 32   ;;  %s671_s15 = smov 2  }
  0x8c   : > { %438 = dma.vmem_to_hbm [thread:$0]  (%p953_p3), %s888_s19, 128, %s886_s8, %s284_s12, %s670_s7, %s670_s7, %s671_s15  }
  0x8d PF: > { %s312_s21 = sand.u32 1, %s642_s9   ;;  %p954_p7 = scmp.ne.s32.totalorder %s948_s24, 0 }
  0x8e   : > { %p955_p10 = scmp.ge.s32.totalorder %s662_s14, 2  ;;  %s313_s27 = scalar_lea.sflag [#allocation4], %s312_s21 }
  0x90   : > { %p448_p9 = pnand %p955_p10, %p954_p7 }
  0x92   : > { %637 = dma.done.wait (!%p448_p9), %s313_s27, 128  }
  0x93   : > { %639 = vsyncadd (!%p448_p9), %s313_s27, 4294967168  ;;  %s21_s14 = sadd.s32 1, %s662_s14   ;;  %s956_s9 = smov %s646_s10 }
  0x94   : > { %p18_p11 = scmp.ge.s32.totalorder %s21_s14, 4   ;;  %s957_s10 = smov %s650_s11 }
  0x95   : > { %s958_s11 = smov %s743_s23  ;;  %s959_s12 = smov %s658_s13 }
  0x96   : > { %s960_s13 = smov %s962_s17  ;;  %20 = sbr.rel (!%p18_p11) target bundleno = 8 (0x8), region = 93 }
  0x9d   :  { %318 = vsyncpa [#allocation3], 1 }
  0x9e   :  { %320 = vsyncpa [#allocation3 + $0x1], 1 }
  0x9f   :  { %321 = vsyncpa [#allocation6], 1 }
  0xa0   :  { %323 = vsyncpa [#allocation6 + $0x1], 1 }
  0xa1   :  { %324 = vsyncpa [#allocation4], 1 }
  0xa2   :  { %326 = vsyncpa [#allocation4 + $0x1], 1 }

</bundles_post_ra>
